<compile_context>
chip_gen: v7x
topology: tpu7x:2x2x1
jax: 0.10.0
libtpu: 0.0.40
codegen_flags: <defaults>
</compile_context>

<pallas_src>
import functools
import math

import jax
import jax.numpy as jnp
import numpy as np
from jax import lax
from jax.experimental import pallas as pl
from jax.experimental.pallas import tpu as pltpu


# ---------------------------------------------------------------------------
# Pallas kernel: fused MLP over a tile of rows
# ---------------------------------------------------------------------------
def _activation(y, activation):
    if activation == "sigmoid":
        return jax.nn.sigmoid(y)
    if activation == "relu":
        return jnp.maximum(y, 0.0)
    raise ValueError(f"unknown activation: {activation}")


def _mlp_kernel(*refs, num_linear, activation, activate_output, has_bn):
    """refs = (x, (W, b) * num_linear, [bn_scale, bn_shift], out)."""
    x_ref = refs[0]
    o_ref = refs[-1]
    p = 1
    y = x_ref[...]
    for layer in range(num_linear):
        w_ref, b_ref = refs[p], refs[p + 1]
        p += 2
        y = jnp.dot(y, w_ref[...],
                    preferred_element_type=jnp.float32,
                    precision=lax.Precision.HIGHEST) + b_ref[...]
        last = layer == num_linear - 1
        if (not last) or activate_output:
            y = _activation(y, activation)
    if has_bn:
        scale_ref, shift_ref = refs[p], refs[p + 1]
        y = y * scale_ref[...] + shift_ref[...]
    o_ref[...] = y.astype(o_ref.dtype)


def _row_tiling(M):
    """Pick (tile_rows, padded_rows): prefer no padding and >=2 grid steps."""
    if M >= 16 and M % 16 == 0:
        tm = M // 2                     # two (or more) big tiles, no padding
        while tm % 16 == 0 and tm > 2048:
            tm //= 2                    # stays a multiple of 8
        return tm, M
    if M <= 4096:
        return M, M                     # single full-array block (always legal)
    tm = 512                            # large ragged M: pad rows to tile multiple
    return tm, ((M + tm - 1) // tm) * tm


# ---------------------------------------------------------------------------
# Wrapper reproducing _InferenceMLP.forward
# ---------------------------------------------------------------------------
def inference_mlp_forward(X, params, *, activation="sigmoid", activate_output=True):
    """Forward pass of _InferenceMLP.

    X: [B, N, ..., N, P] channels-last predicate tensor (arity-many N axes).
    params: {"linears": [(W[K,F], b[F]), ...],
             optional "batchnorm": (scale[F_out], shift[F_out])  # eval-mode affine}
    """
    linears = params["linears"]
    bn = params.get("batchnorm", None)

    P = X.shape[-1]
    lead = X.shape[:-1]
    M = int(np.prod(lead)) if lead else 1
    F_out = linears[-1][0].shape[-1]

    Xf = X.reshape(M, P).astype(jnp.float32)
    TM, Mp = _row_tiling(M)
    if Mp != M:
        Xf = jnp.pad(Xf, ((0, Mp - M), (0, 0)))

    operands = [Xf]
    in_specs = [pl.BlockSpec((TM, P), lambda i: (i, 0))]
    for (W, b) in linears:
        K, F = W.shape
        operands.append(W.astype(jnp.float32))
        operands.append(b.reshape(1, F).astype(jnp.float32))
        in_specs.append(pl.BlockSpec((K, F), lambda i: (0, 0)))
        in_specs.append(pl.BlockSpec((1, F), lambda i: (0, 0)))
    if bn is not None:
        scale, shift = bn
        operands.append(scale.reshape(1, F_out).astype(jnp.float32))
        operands.append(shift.reshape(1, F_out).astype(jnp.float32))
        in_specs.append(pl.BlockSpec((1, F_out), lambda i: (0, 0)))
        in_specs.append(pl.BlockSpec((1, F_out), lambda i: (0, 0)))

    out = pl.pallas_call(
        functools.partial(_mlp_kernel,
                          num_linear=len(linears),
                          activation=activation,
                          activate_output=activate_output,
                          has_bn=bn is not None),
        out_shape=jax.ShapeDtypeStruct((Mp, F_out), jnp.float32),
        grid=(Mp // TM,),
        in_specs=in_specs,
        out_specs=pl.BlockSpec((TM, F_out), lambda i: (i, 0)),
        compiler_params=pltpu.CompilerParams(dimension_semantics=("parallel",)),
    )(*operands)

    if Mp != M:
        out = out[:M]
    return out.reshape(lead + (F_out,))


# ---------------------------------------------------------------------------
# Deterministic parameter init mirroring nn.LazyLinear / nn.Linear defaults
# ---------------------------------------------------------------------------
def init_inference_mlp_params(key, in_features, hidden_size, output_size,
                              batchnorm=False):
    if hidden_size < 1:
        dims = [(in_features, output_size)]
    else:
        dims = [(in_features, hidden_size), (hidden_size, output_size)]
    linears = []
    for (K, F) in dims:
        key, kw, kb = jax.random.split(key, 3)
        bound = 1.0 / math.sqrt(K)
        W = jax.random.uniform(kw, (K, F), jnp.float32, -bound, bound)
        b = jax.random.uniform(kb, (F,), jnp.float32, -bound, bound)
        linears.append((W, b))
    params = {"linears": linears}
    if batchnorm:
        # Eval-mode BatchNorm1d(momentum=0.005) folded to per-channel affine:
        # scale = gamma / sqrt(running_var + eps); shift = beta - running_mean * scale.
        eps = 1e-5
        gamma = jnp.ones((output_size,), jnp.float32)
        beta = jnp.zeros((output_size,), jnp.float32)
        running_mean = jnp.zeros((output_size,), jnp.float32)
        running_var = jnp.ones((output_size,), jnp.float32)
        scale = gamma * lax.rsqrt(running_var + eps)
        shift = beta - running_mean * scale
        params["batchnorm"] = (scale, shift)
    return params


# ---------------------------------------------------------------------------
def _reference_mlp(X, params, activation, activate_output):
    """Pure-JAX reference (mirrors the PyTorch Sequential)."""
    y = X.astype(jnp.float32)
    lin = params["linears"]
    for idx, (W, b) in enumerate(lin):
        y = y @ W + b
        if idx < len(lin) - 1 or activate_output:
            y = jax.nn.sigmoid(y) if activation == "sigmoid" else jnp.maximum(y, 0.0)
    if "batchnorm" in params:
        s, t = params["batchnorm"]
        y = y * s + t
    return y


if __name__ == "__main__":
    key = jax.random.PRNGKey(0)
    kx, kp, kp2 = jax.random.split(key, 3)

    # Small shapes consistent with the NLM usage: arity-2 predicates.
    B, N, arity, P = 2, 8, 2, 4
    hidden, out_size = 32, 8
    X = jax.random.uniform(kx, (B,) + (N,) * arity + (P,), jnp.float32)

    # --- hidden layer + sigmoid, activated output (typical hidden NLM layer) ---
    params = init_inference_mlp_params(kp, P, hidden, out_size, batchnorm=False)
    fwd = jax.jit(functools.partial(inference_mlp_forward,
                                    activation="sigmoid", activate_output=True))
    y = fwd(X, params)
    jax.block_until_ready(y)
    assert y.shape == (B, N, N, out_size)
    y_ref = _reference_mlp(X, params, "sigmoid", True)
    assert bool(jnp.allclose(y, y_ref, atol=1e-5, rtol=1e-5))

    # --- hidden_size < 1 path (single LazyLinear), ReLU, no output activation ---
    params1 = init_inference_mlp_params(kp2, P, 0, out_size, batchnorm=False)
    fwd1 = jax.jit(functools.partial(inference_mlp_forward,
                                     activation="relu", activate_output=False))
    y1 = fwd1(X, params1)
    jax.block_until_ready(y1)
    assert y1.shape == (B, N, N, out_size)
    y1_ref = _reference_mlp(X, params1, "relu", False)
    assert bool(jnp.allclose(y1, y1_ref, atol=1e-5, rtol=1e-5))

    print("KERNEL_OK")
</pallas_src>

<mosaic_0001>
module attributes {stable_mosaic.version = 11 : i64} {
  func.func @_mlp_kernel(%arg0: i32, %arg1: memref<64x4xf32, #tpu.memory_space<vmem>>, %arg2: memref<4x32xf32, #tpu.memory_space<vmem>>, %arg3: memref<1x32xf32, #tpu.memory_space<vmem>>, %arg4: memref<32x8xf32, #tpu.memory_space<vmem>>, %arg5: memref<1x8xf32, #tpu.memory_space<vmem>>, %arg6: memref<64x8xf32, #tpu.memory_space<vmem>>) attributes {dimension_semantics = [#tpu.dimension_semantics<parallel>], iteration_bounds = array<i64: 2>, scalar_prefetch = 0 : i64, scratch_operands = 0 : i64, tpu.core_type = #tpu.core_type<tc>, window_params = [{transform_indices = @transform_0, window_bounds = array<i64: 64, 4>}, {pipeline_mode = #tpu.pipeline_mode<synchronous>, transform_indices = @transform_1, window_bounds = array<i64: 4, 32>}, {pipeline_mode = #tpu.pipeline_mode<synchronous>, transform_indices = @transform_2, window_bounds = array<i64: 1, 32>}, {pipeline_mode = #tpu.pipeline_mode<synchronous>, transform_indices = @transform_3, window_bounds = array<i64: 32, 8>}, {pipeline_mode = #tpu.pipeline_mode<synchronous>, transform_indices = @transform_4, window_bounds = array<i64: 1, 8>}, {transform_indices = @transform_5, window_bounds = array<i64: 64, 8>}]} {
    %c0 = arith.constant 0 : index
    %c0_0 = arith.constant 0 : index
    %0 = vector.load %arg1[%c0, %c0_0] : memref<64x4xf32, #tpu.memory_space<vmem>>, vector<64x4xf32>
    %c0_1 = arith.constant 0 : index
    %c0_2 = arith.constant 0 : index
    %1 = vector.load %arg2[%c0_1, %c0_2] : memref<4x32xf32, #tpu.memory_space<vmem>>, vector<4x32xf32>
    %cst = arith.constant dense<0.000000e+00> : vector<64x32xf32>
    %2 = tpu.matmul %0, %1, %cst {dimension_numbers = #tpu.dot_dimension_numbers<[1], [0], [0], [1], [0, 0, 1, 1], [], []>, precision = #tpu.contract_precision<fp32>} : vector<64x4xf32>, vector<4x32xf32>, vector<64x32xf32> -> vector<64x32xf32>
    %c0_3 = arith.constant 0 : index
    %c0_4 = arith.constant 0 : index
    %3 = vector.load %arg3[%c0_3, %c0_4] : memref<1x32xf32, #tpu.memory_space<vmem>>, vector<1x32xf32>
    %4 = vector.broadcast %3 : vector<1x32xf32> to vector<64x32xf32>
    %5 = arith.addf %2, %4 : vector<64x32xf32>
    %6 = arith.negf %5 : vector<64x32xf32>
    %7 = math.exp %6 : vector<64x32xf32>
    %cst_5 = arith.constant 1.000000e+00 : f32
    %8 = vector.broadcast %cst_5 : f32 to vector<64x32xf32>
    %9 = arith.addf %8, %7 : vector<64x32xf32>
    %10 = arith.divf %8, %9 : vector<64x32xf32>
    %c0_6 = arith.constant 0 : index
    %c0_7 = arith.constant 0 : index
    %11 = vector.load %arg4[%c0_6, %c0_7] : memref<32x8xf32, #tpu.memory_space<vmem>>, vector<32x8xf32>
    %cst_8 = arith.constant dense<0.000000e+00> : vector<64x8xf32>
    %12 = tpu.matmul %10, %11, %cst_8 {dimension_numbers = #tpu.dot_dimension_numbers<[1], [0], [0], [1], [0, 0, 1, 1], [], []>, precision = #tpu.contract_precision<fp32>} : vector<64x32xf32>, vector<32x8xf32>, vector<64x8xf32> -> vector<64x8xf32>
    %c0_9 = arith.constant 0 : index
    %c0_10 = arith.constant 0 : index
    %13 = vector.load %arg5[%c0_9, %c0_10] : memref<1x8xf32, #tpu.memory_space<vmem>>, vector<1x8xf32>
    %14 = vector.broadcast %13 : vector<1x8xf32> to vector<64x8xf32>
    %15 = arith.addf %12, %14 : vector<64x8xf32>
    %16 = arith.negf %15 : vector<64x8xf32>
    %17 = math.exp %16 : vector<64x8xf32>
    %cst_11 = arith.constant 1.000000e+00 : f32
    %18 = vector.broadcast %cst_11 : f32 to vector<64x8xf32>
    %19 = arith.addf %18, %17 : vector<64x8xf32>
    %20 = arith.divf %18, %19 : vector<64x8xf32>
    %c0_12 = arith.constant 0 : index
    %c0_13 = arith.constant 0 : index
    %21 = vector.load %arg6[%c0_12, %c0_13] : memref<64x8xf32, #tpu.memory_space<vmem>>, vector<64x8xf32>
    tpu.vector_store %arg6[%c0_12, %c0_13], %20 {strides = array<i32>} : memref<64x8xf32, #tpu.memory_space<vmem>>, vector<64x8xf32>,
    return
  }
  func.func @transform_0(%arg0: i32) -> (i32, i32) {
    %c0_i32 = arith.constant 0 : i32
    %c0_i32_0 = arith.constant 0 : i32
    return %arg0, %c0_i32 : i32, i32
  }
  func.func @transform_1(%arg0: i32) -> (i32, i32) {
    %c0_i32 = arith.constant 0 : i32
    %c0_i32_0 = arith.constant 0 : i32
    %c0_i32_1 = arith.constant 0 : i32
    return %c0_i32, %c0_i32_0 : i32, i32
  }
  func.func @transform_2(%arg0: i32) -> (i32, i32) {
    %c0_i32 = arith.constant 0 : i32
    %c0_i32_0 = arith.constant 0 : i32
    %c0_i32_1 = arith.constant 0 : i32
    return %c0_i32, %c0_i32_0 : i32, i32
  }
  func.func @transform_3(%arg0: i32) -> (i32, i32) {
    %c0_i32 = arith.constant 0 : i32
    %c0_i32_0 = arith.constant 0 : i32
    %c0_i32_1 = arith.constant 0 : i32
    return %c0_i32, %c0_i32_0 : i32, i32
  }
  func.func @transform_4(%arg0: i32) -> (i32, i32) {
    %c0_i32 = arith.constant 0 : i32
    %c0_i32_0 = arith.constant 0 : i32
    %c0_i32_1 = arith.constant 0 : i32
    return %c0_i32, %c0_i32_0 : i32, i32
  }
  func.func @transform_5(%arg0: i32) -> (i32, i32) {
    %c0_i32 = arith.constant 0 : i32
    %c0_i32_0 = arith.constant 0 : i32
    return %arg0, %c0_i32 : i32, i32
  }
}

</mosaic_0001>

<bundles_post_ra>
// kernel: inference_mlp_forward.1
= control target key start
LH: loop header
LB: loop body
LE: loop exit
PB: predicated region body
PF: predicated region fallthrough
CT: control target
= control target key end

     0   :  { %10 = vsyncpa [#allocation3], 0  ;;  %s3106_s0 = inlined_call_operand.vmem [shape: f32[128,4], index: 0, kind: input, shape index: {}]   ;;  %s3107_s1 = inlined_call_operand.vmem [shape: f32[4,32], index: 1, kind: input, shape index: {}]   ;;  %s3108_s2 = inlined_call_operand.vmem [shape: f32[1,32], index: 2, kind: input, shape index: {}]   ;;  %s3109_s3 = inlined_call_operand.vmem [shape: f32[32,8], index: 3, kind: input, shape index: {}]   ;;  %s3110_s4 = inlined_call_operand.vmem [shape: f32[1,8], index: 4, kind: input, shape index: {}]   ;;  %s3111_s5 = inlined_call_operand.hbm [shape: f32[128,8], index: 5, kind: output, shape index: {}]  }
   0x1   :  { %12 = vsyncpa [#allocation3 + $0x1], 0  ;;  %s2728_s18 = smov 0   ;;  %s2730_s19 = smov 0  }
   0x2   :  { %s2732_s20 = smov 0   ;;  %s2734_s21 = smov 0  }
   0x3 LB: > { %s2749_s22 = sadd.s32 4294967295, %s2693_s21   ;;  %s2021_s23 = sadd.s32 4294967294, %s2693_s21   ;;  %s2693_s21 = sphi %s2734_s21, %s3117_s21   ;;  %s2689_s20 = sphi %s2732_s20, %s3116_s20   ;;  %s2685_s19 = sphi %s2730_s19, %s3115_s19   ;;  %s2681_s18 = sphi %s2728_s18, %s3114_s18  }
   0x4   : > { %s2753_s24 = sadd.s32 1, %s2693_s21   ;;  %s135_s25 = sadd.s32 1, %s2689_s20 }
   0x5   : > { %s132_s26 = ssub.s32 %s2693_s21, %s2753_s24  ;;  %p145_p0 = scmp.ne.s32.totalorder %s2689_s20, %s2685_s19 }
   0x6   : > { %p133_p1 = scmp.eq.s32.totalorder %s132_s26, 0  ;;  %p146_p2 = scmp.eq.s32.totalorder %s2749_s22, 1 }
   0x7   : > { %p151_p3 = scmp.ne.s32.totalorder %s2685_s19, %s2681_s18  ;;  %p152_p4 = scmp.eq.s32.totalorder %s2021_s23, 1 }
   0x8   : > { %s2764_s27 = scalar_select %p133_p1, %s2689_s20, %s135_s25  }
   0x9   : > { %p2766_p5 = por %p146_p2, %p145_p0  ;;  %p2770_p6 = por %p152_p4, %p151_p3 }
   0xa   : > { %p2024_p7 = scmp.ge.s32.totalorder %s2693_s21, 1  ;;  %p191_p8 = scmp.lt.s32.totalorder %s2693_s21, 3 }
   0xc   : > { %p192_p9 = pnand %p2024_p7, %p191_p8 }
   0xd   : > { %v234_v0 = vld [vmem:[%s3107_s1] sm:$0xf] (!%p192_p9)  ;;  %vm267_vm0 = vcmask (!%p192_p9), 1043456   ;;  %s2026_s7 = sshll.u32 (!%p192_p9), %s2749_s22, 3  ;;  %vm242_vm1 = vcmask (!%p192_p9), 31744   ;;  %vm1077_vm2 = vcmask (!%p192_p9), 261120  }
   0xe   : > { %195 = sbr.rel (%p192_p9) target bundleno = 722 (0x2d2), region = 40  ;;  %v269_v1 = vsel (!%p192_p9), %vm267_vm0, %v234_v0, 0  ;;  %p220_p10 = scmp.lt.s32.totalorder (!%p192_p9), %s2026_s7, 15  ;;  %v1066_v63 = vld [vmem:[%s3109_s3] sm:$0xff] (!%p192_p9)  ;;  %v1067_v0 = vld [vmem:[%s3109_s3 + $0x8] sm:$0xff] (!%p192_p9)  ;;  %vm1936_vm3 = vcmask (!%p192_p9), 64512  }
   0xf   : > { %v2780_v2 = vand.u32 (!%p192_p9), 4294901760, %v269_v1  ;;  %s2695_s17 = smov (!%p192_p9), [#allocation2]  }
  0x10   : > { %s2635_s23 = sshll.u32 (!%p192_p9), %s2695_s17, 4  ;;  %s2636_s23 = int_to_ptr.vmem [resolvable:$false] %s2635_s23 }
  0x11   : > { %2178 = vmatprep.subr.mxu0 (!%p192_p9), %v2780_v2  ;;  %v2784_v3 = vsub.f32 (!%p192_p9), %v269_v1, %v2780_v2  ;;  %v1103_v1 = vand.u32 (!%p192_p9), 4294901760, %v1066_v63  ;;  %s2637_s25 = scalar_lea.vmem (!%p192_p9), %s2636_s23, 2048 }
  0x12   : > { %2179 = vmatpush3.msra.mxu0 (!%p192_p9), %v2780_v2 }
  0x13   : > { %v2791_v4 = vand.u32 (!%p192_p9), 4294901760, %v2784_v3 }
  0x15   : > { %s3119_s7 = smov (!%p220_p10, %s2026_s7), 15  ;;  %v421_v9 = vsub.f32 %v2784_v3, %v2791_v4 }
  0x16   : > { %s2027_s8 = sshll.u32 %s3119_s7, 3 }
  0x17   : > { %s223_s11 = scalar_lea.vmem %s3106_s0, %s2027_s8  ;;  %v422_v21 = vand.u32 4294901760, %v421_v9  ;;  %v1253_v9 = vsub.f32 %v1066_v63, %v1103_v1  ;;  %s216_s8 = sand.u32 1, %s2685_s19  }
  0x18   : > { %v226_v5 = vld [vmem:[%s223_s11] sm:$0xff]  ;;  %v227_v6 = vld [vmem:[%s223_s11 + $0x8] sm:$0xff]  ;;  %v228_v7 = vld [vmem:[%s223_s11 + $0x10] sm:$0xff]  ;;  %s2025_s9 = sshll.u32 %s216_s8, 6  ;;  %s3065_s16 = scalar_lea.sflag [#allocation3], %s216_s8 }
  0x19   : > { %v244_v8 = vsel %vm242_vm1, %v226_v5, 0  ;;  %v247_v10 = vsel %vm242_vm1, %v227_v6, 0  ;;  %v250_v11 = vsel %vm242_vm1, %v228_v7, 0  ;;  %v229_v12 = vld [vmem:[%s223_s11 + $0x18] sm:$0xff]  ;;  %v230_v13 = vld [vmem:[%s223_s11 + $0x20] sm:$0xff]  ;;  %v231_v14 = vld [vmem:[%s223_s11 + $0x28] sm:$0xff]  ;;  %2192 = vmatprep.subr.mxu0 %v422_v21 }
  0x1a   : > { %v2798_v15 = vand.u32 4294901760, %v244_v8  ;;  %v2800_v16 = vand.u32 4294901760, %v247_v10  ;;  %v2802_v17 = vand.u32 4294901760, %v250_v11  ;;  %v253_v18 = vsel %vm242_vm1, %v229_v12, 0  ;;  %v232_v19 = vld [vmem:[%s223_s11 + $0x30] sm:$0xff]  ;;  %v233_v20 = vld [vmem:[%s223_s11 + $0x38] sm:$0xff] }
  0x1b   : > { %v2805_v22 = vand.u32 4294901760, %v253_v18  ;;  %v256_v23 = vsel %vm242_vm1, %v230_v13, 0  ;;  %v259_v24 = vsel %vm242_vm1, %v231_v14, 0  ;;  %v262_v31 = vsel %vm242_vm1, %v232_v19, 0  ;;  %s218_s10 = scalar_lea.vmem [#allocation2], %s2025_s9  ;;  %s2051_s11 = sshll.u32 %s2749_s22, 10 }
  0x1c   : > { %v2810_v25 = vsub.f32 %v244_v8, %v2798_v15  ;;  %v2813_v26 = vsub.f32 %v247_v10, %v2800_v16  ;;  %v2816_v27 = vsub.f32 %v250_v11, %v2802_v17  ;;  %v2818_v28 = vand.u32 4294901760, %v256_v23  ;;  %s1959_s12 = sshll.u32 %s218_s10, 4  ;;  %s3058_s15 = scalar_lea.hbm %s3111_s5, %s2051_s11  ;;  %s3060_s12 = int_to_ptr.vmem [resolvable:$true] %s1959_s12 }
  0x1d   : > { %v2821_v29 = vsub.f32 %v253_v18, %v2805_v22  ;;  %v2823_v30 = vand.u32 4294901760, %v259_v24  ;;  %v265_v32 = vsel %vm242_vm1, %v233_v20, 0  ;;  %v2835_v39 = vand.u32 4294901760, %v262_v31  ;;  %s2631_s22 = scalar_lea.vmem %s3060_s12, 1024  ;;  %p2638_p0 = scmp.lt.s32.totalorder %s3060_s12, %s2636_s23 }
  0x1e   : > { %v339_v33 = vand.u32 4294901760, %v2810_v25  ;;  %v349_v34 = vand.u32 4294901760, %v2813_v26  ;;  %v359_v35 = vand.u32 4294901760, %v2816_v27  ;;  %v2831_v36 = vsub.f32 %v256_v23, %v2818_v28  ;;  %p2632_p11 = scmp.ne.s32.totalorder %s3060_s12, %s2631_s22  ;;  %p2639_p1 = scmp.lt.s32.totalorder %s2637_s25, %s2631_s22 }
  0x1f   : > { %v369_v37 = vand.u32 4294901760, %v2821_v29  ;;  %v388_v38 = vsub.f32 %v259_v24, %v2823_v30  ;;  %v2837_v40 = vand.u32 4294901760, %v265_v32  ;;  %v398_v47 = vsub.f32 %v262_v31, %v2835_v39  ;;  %v2028_v31 = vld [vmem:[%s3108_s2] ss:$0 sm:$0xff] }
  0x20   : > { %v340_v41 = vsub.f32 %v2810_v25, %v339_v33  ;;  %v350_v42 = vsub.f32 %v2813_v26, %v349_v34  ;;  %v360_v43 = vsub.f32 %v2816_v27, %v359_v35  ;;  %v379_v44 = vand.u32 4294901760, %v2831_v36  ;;  %p2633_p12 = pnand %p2632_p11, %p2766_p5  ;;  %p2640_p2 = por %p2639_p1, %p2638_p0 }
  0x21   : > { %v370_v45 = vsub.f32 %v2821_v29, %v369_v37  ;;  %v389_v46 = vand.u32 4294901760, %v388_v38  ;;  %v408_v48 = vsub.f32 %v265_v32, %v2837_v40  ;;  %v399_v53 = vand.u32 4294901760, %v398_v47 }
  0x22   : > { %v341_v49 = vand.u32 4294901760, %v340_v41  ;;  %v351_v50 = vand.u32 4294901760, %v350_v42  ;;  %v361_v51 = vand.u32 4294901760, %v360_v43  ;;  %v380_v52 = vsub.f32 %v2831_v36, %v379_v44  ;;  %p2634_p13 = pneg %p2633_p12 }
  0x23   : > { %v371_v54 = vand.u32 4294901760, %v370_v45  ;;  %v390_v55 = vsub.f32 %v388_v38, %v389_v46  ;;  %v409_v56 = vand.u32 4294901760, %v408_v48  ;;  %v400_v58 = vsub.f32 %v398_v47, %v399_v53 }
  0x24   : > { %2180 = vmatprep.mubr.f32.mxu0 %v341_v49  ;;  %v381_v57 = vand.u32 4294901760, %v380_v52  ;;  %v1254_v11 = vand.u32 4294901760, %v1253_v9  ;;  %p2641_p3 = pnand %p2640_p2, %p2634_p13 }
  0x25   : > { %2181 = vmatmul.mubr.f32.vlgmr.msra.gmra.mrb[0].mxu0 %v351_v50  ;;  %v391_v59 = vand.u32 4294901760, %v390_v55  ;;  %v410_v60 = vsub.f32 %v408_v48, %v409_v56  ;;  %v401_v61 = vand.u32 4294901760, %v400_v58 }
  0x26   : > { %2193 = vmatpush3.msra.mxu0 %v422_v21  ;;  %2183 = vmatprep.mubr.f32.mxu0 %v361_v51  ;;  %v1255_v13 = vsub.f32 %v1253_v9, %v1254_v11 }
  0x27   : > { %2206 = vmatprep.subr.mxu0 %v2784_v3  ;;  %v411_v62 = vand.u32 4294901760, %v410_v60 }
  0x29   : > { %2184 = vmatmul.mubr.f32.gmra.mrb[2].mxu0 %v371_v54 }
  0x2a   : > { %2186 = vmatprep.mubr.f32.mxu0 %v381_v57 }
  0x2d   : > { %2187 = vmatmul.mubr.f32.gmra.mrb[4].mxu0 %v391_v59 }
  0x2e   : > { %2189 = vmatprep.mubr.f32.mxu0 %v401_v61 }
  0x31   : > { %2190 = vmatmul.mubr.f32.gmra.mrb[6].mxu0 %v411_v62 }
  0x32   : > { %2194 = vmatprep.mubr.f32.mxu0 %v2798_v15 }
  0x35   : > { %2195 = vmatmul.mubr.f32.vlgmr.msra.gmra.mrb[0].mxu0 %v2800_v16 }
  0x36   : > { %2207 = vmatpush3.msra.mxu0 %v2784_v3  ;;  %2197 = vmatprep.mubr.f32.mxu0 %v2802_v17  ;;  %v1068_v3 = vld [vmem:[%s3109_s3 + $0x10] sm:$0xff] }
  0x37   : > { %2220 = vmatprep.subr.mxu0 %v2780_v2  ;;  %v1109_v6 = vand.u32 4294901760, %v1068_v3 }
  0x39   : > { %2198 = vmatmul.mubr.f32.gmra.mrb[2].mxu0 %v2805_v22 }
  0x3a   : > { %2200 = vmatprep.mubr.f32.mxu0 %v2818_v28 }
  0x3d   : > { %2201 = vmatmul.mubr.f32.gmra.mrb[4].mxu0 %v2823_v30 }
  0x3e   : > { %2203 = vmatprep.mubr.f32.mxu0 %v2835_v39 }
  0x41   : > { %2204 = vmatmul.mubr.f32.gmra.mrb[6].mxu0 %v2837_v40 }
  0x42   : > { %2208 = vmatprep.mubr.f32.mxu0 %v2810_v25 }
  0x45   : > { %2209 = vmatmul.mubr.f32.vlgmr.msra.gmra.mrb[0].mxu0 %v2813_v26 }
  0x46   : > { %2221 = vmatpush3.msra.mxu0 %v2780_v2  ;;  %2211 = vmatprep.mubr.f32.mxu0 %v2816_v27 }
  0x47   : > { %2234 = vmatprep.subr.mxu0 %v2791_v4 }
  0x49   : > { %2212 = vmatmul.mubr.f32.gmra.mrb[2].mxu0 %v2821_v29 }
  0x4a   : > { %2214 = vmatprep.mubr.f32.mxu0 %v2831_v36 }
  0x4d   : > { %2215 = vmatmul.mubr.f32.gmra.mrb[4].mxu0 %v388_v38 }
  0x4e   : > { %2217 = vmatprep.mubr.f32.mxu0 %v398_v47 }
  0x51   : > { %2218 = vmatmul.mubr.f32.gmra.mrb[6].mxu0 %v408_v48 }
  0x52   : > { %2222 = vmatprep.mubr.f32.mxu0 %v339_v33 }
  0x55   : > { %2223 = vmatmul.mubr.f32.vlgmr.msra.gmra.mrb[0].mxu0 %v349_v34 }
  0x56   : > { %2235 = vmatpush3.msra.mxu0 %v2791_v4  ;;  %2225 = vmatprep.mubr.f32.mxu0 %v359_v35  ;;  %v1069_v4 = vld [vmem:[%s3109_s3 + $0x18] sm:$0xff] }
  0x57   : > { %2248 = vmatprep.subr.mxu0 %v2780_v2  ;;  %v1112_v7 = vand.u32 4294901760, %v1069_v4 }
  0x59   : > { %2226 = vmatmul.mubr.f32.gmra.mrb[2].mxu0 %v369_v37  ;;  %v2899_v8 = vpack.c.bf16 %v1112_v7, %v1109_v6 }
  0x5a   : > { %2228 = vmatprep.mubr.f32.mxu0 %v379_v44 }
  0x5d   : > { %2229 = vmatmul.mubr.f32.gmra.mrb[4].mxu0 %v389_v46 }
  0x5e   : > { %2231 = vmatprep.mubr.f32.mxu0 %v399_v53 }
  0x61   : > { %2232 = vmatmul.mubr.f32.gmra.mrb[6].mxu0 %v409_v56 }
  0x62   : > { %2236 = vmatprep.mubr.f32.mxu0 %v2798_v15 }
  0x65   : > { %2237 = vmatmul.mubr.f32.vlgmr.msra.gmra.mrb[0].mxu0 %v2800_v16 }
  0x66   : > { %2249 = vmatpush3.msra.mxu0 %v2780_v2  ;;  %2239 = vmatprep.mubr.f32.mxu0 %v2802_v17  ;;  %v1106_v2 = vand.u32 4294901760, %v1067_v0 }
  0x68   : > { %v2896_v5 = vpack.c.bf16 %v1106_v2, %v1103_v1  ;;  %v1260_v10 = vsub.f32 %v1067_v0, %v1106_v2 }
  0x69   : > { %2240 = vmatmul.mubr.f32.gmra.mrb[2].mxu0 %v2805_v22 }
  0x6a   : > { %2242 = vmatprep.mubr.f32.mxu0 %v2818_v28  ;;  %2383 = vmatprep.subr.bf16.mxu1 %v2896_v5  ;;  %v1261_v12 = vand.u32 4294901760, %v1260_v10  ;;  %v2909_v27 = vpack.c.bf16 %v1260_v10, %v1253_v9 }
  0x6b   : > { %2385 = vmatpush3.bf16.msra.mxu1 %v2896_v5 }
  0x6c   : > { %2387 = vmatprep.subr.bf16.mxu1 %v2899_v8  ;;  %v1262_v14 = vsub.f32 %v1260_v10, %v1261_v12  ;;  %v2913_v29 = vpack.c.bf16 %v1261_v12, %v1254_v11 }
  0x6d   : > { %2243 = vmatmul.mubr.f32.gmra.mrb[4].mxu0 %v2823_v30 }
  0x6e   : > { %2245 = vmatprep.mubr.f32.mxu0 %v2835_v39  ;;  %v1263_v18 = vand.u32 4294901760, %v1262_v14 }
  0x6f   : > { %2389 = vmatpush3.bf16.msra.mxu1 %v2899_v8 }
  0x71   : > { %2246 = vmatmul.mubr.f32.gmra.mrb[6].mxu0 %v2837_v40 }
  0x72   : > { %2250 = vmatprep.mubr.f32.mxu0 %v2798_v15  ;;  %v1267_v15 = vsub.f32 %v1068_v3, %v1109_v6 }
  0x74   : > { %v1268_v19 = vand.u32 4294901760, %v1267_v15 }
  0x75   : > { %2251 = vmatmul.mubr.f32.vlgmr.msra.gmra.mrb[0].mxu0 %v2800_v16  ;;  %v1274_v16 = vsub.f32 %v1069_v4, %v1112_v7 }
  0x76   : > { %2253 = vmatprep.mubr.f32.mxu0 %v2802_v17  ;;  %v1256_v17 = vand.u32 4294901760, %v1255_v13 }
  0x77   : > { %v1275_v20 = vand.u32 4294901760, %v1274_v16 }
  0x78   : > { %v2904_v21 = vpack.c.bf16 %v1263_v18, %v1256_v17 }
  0x79   : > { %2254 = vmatmul.mubr.f32.gmra.mrb[2].mxu0 %v2805_v22  ;;  %v1269_v22 = vsub.f32 %v1267_v15, %v1268_v19  ;;  %v1276_v23 = vsub.f32 %v1274_v16, %v1275_v20 }
  0x7a   : > { %2256 = vmatprep.mubr.f32.mxu0 %v2818_v28  ;;  %2391 = vmatprep.subr.bf16.mxu1 %v2904_v21  ;;  %v2911_v28 = vpack.c.bf16 %v1274_v16, %v1267_v15 }
  0x7b   : > { %v1270_v24 = vand.u32 4294901760, %v1269_v22  ;;  %v1277_v25 = vand.u32 4294901760, %v1276_v23 }
  0x7d   : > { %2257 = vmatmul.mubr.f32.gmra.mrb[4].mxu0 %v2823_v30  ;;  %v2907_v26 = vpack.c.bf16 %v1277_v25, %v1270_v24  ;;  %v2915_v30 = vpack.c.bf16 %v1275_v20, %v1268_v19 }
  0x7e   : > { %2259 = vmatprep.mubr.f32.mxu0 %v2835_v39 }
  0x81   : > { %2260 = vmatmul.mubr.f32.gmra.mrb[6].mxu0 %v2837_v40 }
 0x148   : > { %v2252_v32 = vpop.f32.mrb[0].mxu0 }
 0x149   : > { %v2430_v33 = vadd.f32 %v2252_v32, %v2028_v31  ;;  %v972_v34 = vpop.f32.mrb[1].mxu0 }
 0x14a   : > { %v2431_v35 = vadd.f32 %v2028_v31, %v972_v34 }
 0x14b   : > { %v2030_v36 = vmul.f32 -1.442695, %v2430_v33 }
 0x14c   : > { %v2029_v37 = vmul.f32 -1.442695, %v2431_v35  ;;  %v2255_v38 = vpop.f32.mrb[2].mxu0 }
 0x14d   : > { %2567 = vpow2.f32 %v2030_v36  ;;  %v2432_v39 = vadd.f32 %v2255_v38, %v2028_v31  ;;  %v984_v40 = vpop.f32.mrb[3].mxu0 }
 0x14e   : > { %2569 = vpow2.f32 %v2029_v37  ;;  %v2433_v41 = vadd.f32 %v2028_v31, %v984_v40 }
 0x14f   : > { %v2032_v42 = vmul.f32 -1.442695, %v2432_v39 }
 0x150   : > { %v2031_v43 = vmul.f32 -1.442695, %v2433_v41  ;;  %v2258_v44 = vpop.f32.mrb[4].mxu0 }
 0x151   : > { %2571 = vpow2.f32 %v2032_v42  ;;  %v2434_v45 = vadd.f32 %v2258_v44, %v2028_v31  ;;  %v996_v46 = vpop.f32.mrb[5].mxu0 }
 0x152   : > { %2573 = vpow2.f32 %v2031_v43  ;;  %v2435_v47 = vadd.f32 %v2028_v31, %v996_v46 }
 0x153   : > { %v2034_v48 = vmul.f32 -1.442695, %v2434_v45 }
 0x154   : > { %v2033_v49 = vmul.f32 -1.442695, %v2435_v47  ;;  %v2261_v50 = vpop.f32.mrb[6].mxu0 }
 0x155   : > { %2575 = vpow2.f32 %v2034_v48  ;;  %v2436_v51 = vadd.f32 %v2261_v50, %v2028_v31  ;;  %v1008_v52 = vpop.f32.mrb[7].mxu0 }
 0x156   : > { %2577 = vpow2.f32 %v2033_v49  ;;  %v2437_v53 = vadd.f32 %v2028_v31, %v1008_v52 }
 0x157   : > { %v2568_v54 = vpop.eup %2567  ;;  %v2036_v55 = vmul.f32 -1.442695, %v2436_v51 }
 0x158   : > { %v2570_v56 = vpop.eup %2569  ;;  %v1043_v57 = vadd.f32 1.0, %v2568_v54  ;;  %v2035_v58 = vmul.f32 -1.442695, %v2437_v53 }
 0x159   : > { %v1042_v59 = vadd.f32 1.0, %v2570_v56  ;;  %2579 = vpow2.f32 %v2036_v55 }
 0x15a   : > { %2581 = vrcp.f32 %v1043_v57 }
 0x15b   : > { %v2572_v60 = vpop.eup %2571  ;;  %2583 = vrcp.f32 %v1042_v59 }
 0x15c   : > { %v2574_v61 = vpop.eup %2573  ;;  %v1045_v62 = vadd.f32 1.0, %v2572_v60  ;;  %2585 = vpow2.f32 %v2035_v58 }
 0x15d   : > { %v1044_v63 = vadd.f32 1.0, %v2574_v61 }
 0x15e   : > { %2587 = vrcp.f32 %v1045_v62 }
 0x15f   : > { %v2576_v0 = vpop.eup %2575  ;;  %2589 = vrcp.f32 %v1044_v63 }
 0x160   : > { %v2578_v1 = vpop.eup %2577  ;;  %v1047_v2 = vadd.f32 1.0, %v2576_v0 }
 0x161   : > { %v1046_v3 = vadd.f32 1.0, %v2578_v1 }
 0x162   : > { %2591 = vrcp.f32 %v1047_v2 }
 0x163   : > { %v2580_v4 = vpop.eup %2579  ;;  %2593 = vrcp.f32 %v1046_v3 }
 0x164   : > { %v2582_v6 = vpop.eup %2581  ;;  %v1049_v7 = vadd.f32 1.0, %v2580_v4 }
 0x165   : > { %v2584_v9 = vpop.eup %2583  ;;  %v1082_v10 = vsel %vm1077_vm2, %v2582_v6, 0 }
 0x166   : > { %v2586_v11 = vpop.eup %2585  ;;  %2595 = vrcp.f32 %v1049_v7  ;;  %v1079_v12 = vsel %vm1077_vm2, %v2584_v9, 0  ;;  %v2922_v13 = vand.u32 4294901760, %v1082_v10 }
 0x167   : > { %v1048_v14 = vadd.f32 1.0, %v2586_v11  ;;  %v2924_v15 = vand.u32 4294901760, %v1079_v12 }
 0x168   : > { %v2588_v16 = vpop.eup %2587  ;;  %v2927_v17 = vsub.f32 %v1082_v10, %v2922_v13 }
 0x169   : > { %v2590_v18 = vpop.eup %2589  ;;  %2597 = vrcp.f32 %v1048_v14  ;;  %v2930_v19 = vsub.f32 %v1079_v12, %v2924_v15  ;;  %v1088_v20 = vsel %vm1077_vm2, %v2588_v16, 0 }
 0x16a   : > { %v1183_v22 = vand.u32 4294901760, %v2927_v17  ;;  %v1085_v23 = vsel %vm1077_vm2, %v2590_v18, 0  ;;  %v2935_v24 = vand.u32 4294901760, %v1088_v20 }
 0x16b   : > { %v1173_v25 = vand.u32 4294901760, %v2930_v19  ;;  %v2938_v31 = vand.u32 4294901760, %v1085_v23 }
 0x16c   : > { %v2592_v32 = vpop.eup %2591  ;;  %v1184_v33 = vsub.f32 %v2927_v17, %v1183_v22  ;;  %v2944_v34 = vsub.f32 %v1088_v20, %v2935_v24 }
 0x16d   : > { %v2594_v35 = vpop.eup %2593  ;;  %v1174_v36 = vsub.f32 %v2930_v19, %v1173_v25  ;;  %v2950_v37 = vsub.f32 %v1085_v23, %v2938_v31  ;;  %v1094_v38 = vsel %vm1077_vm2, %v2592_v32, 0 }
 0x16e   : > { %v1203_v39 = vand.u32 4294901760, %v2944_v34  ;;  %v1091_v40 = vsel %vm1077_vm2, %v2594_v35, 0  ;;  %v2955_v41 = vand.u32 4294901760, %v1094_v38  ;;  %v1185_v46 = vand.u32 4294901760, %v1184_v33 }
 0x16f   : > { %v1175_v42 = vand.u32 4294901760, %v1174_v36  ;;  %v1193_v43 = vand.u32 4294901760, %v2950_v37  ;;  %v2958_v44 = vand.u32 4294901760, %v1091_v40 }
 0x170   : > { %v2596_v45 = vpop.eup %2595  ;;  %v1204_v47 = vsub.f32 %v2944_v34, %v1203_v39  ;;  %v2964_v48 = vsub.f32 %v1094_v38, %v2955_v41 }
 0x171   : > { %2270 = vmatprep.mubr.f32.mxu1 %v1175_v42  ;;  %v1194_v49 = vsub.f32 %v2950_v37, %v1193_v43  ;;  %v2970_v50 = vsub.f32 %v1091_v40, %v2958_v44  ;;  %v1100_v51 = vsel %vm1077_vm2, %v2596_v45, 0 }
 0x172   : > { %2271 = vmatmul.mubr.f32.vlgmr.msra.gmra.mrb[0].mxu1 %v1185_v46  ;;  %v1223_v52 = vand.u32 4294901760, %v2964_v48  ;;  %v2974_v53 = vand.u32 4294901760, %v1100_v51  ;;  %v1205_v57 = vand.u32 4294901760, %v1204_v47 }
 0x173   : > { %v2598_v54 = vpop.eup %2597  ;;  %2393 = vmatpush3.bf16.msra.mxu1 %v2904_v21  ;;  %v1195_v55 = vand.u32 4294901760, %v1194_v49  ;;  %v1213_v56 = vand.u32 4294901760, %v2970_v50 }
 0x174   : > { %2395 = vmatprep.subr.bf16.mxu1 %v2907_v26  ;;  %v1224_v58 = vsub.f32 %v2964_v48, %v1223_v52  ;;  %v1097_v59 = vsel %vm1077_vm2, %v2598_v54, 0  ;;  %v1242_v60 = vsub.f32 %v1100_v51, %v2974_v53 }
 0x175   : > { %2273 = vmatprep.mubr.f32.mxu1 %v1195_v55  ;;  %v1214_v61 = vsub.f32 %v2970_v50, %v1213_v56  ;;  %v2983_v62 = vand.u32 4294901760, %v1097_v59 }
 0x176   : > { %2274 = vmatmul.mubr.f32.gmra.mrb[2].mxu1 %v1205_v57  ;;  %v1243_v63 = vand.u32 4294901760, %v1242_v60  ;;  %v1225_v1 = vand.u32 4294901760, %v1224_v58 }
 0x177   : > { %v1215_v21 = vand.u32 4294901760, %v1214_v61  ;;  %2397 = vmatpush3.bf16.msra.mxu1 %v2907_v26  ;;  %v1232_v0 = vsub.f32 %v1097_v59, %v2983_v62 }
 0x178   : > { %2399 = vmatprep.subr.bf16.mxu1 %v2909_v27  ;;  %v1244_v3 = vsub.f32 %v1242_v60, %v1243_v63 }
 0x179   : > { %2276 = vmatprep.mubr.f32.mxu1 %v1215_v21  ;;  %v1233_v2 = vand.u32 4294901760, %v1232_v0 }
 0x17a   : > { %2277 = vmatmul.mubr.f32.gmra.mrb[4].mxu1 %v1225_v1  ;;  %v1245_v7 = vand.u32 4294901760, %v1244_v3 }
 0x17b   : > { %v1234_v4 = vsub.f32 %v1232_v0, %v1233_v2 }
 0x17d   : > { %v1235_v6 = vand.u32 4294901760, %v1234_v4 }
 0x17f   : > { %2279 = vmatprep.mubr.f32.mxu1 %v1235_v6 }
 0x180   : > { %2280 = vmatmul.mubr.f32.gmra.mrb[6].mxu1 %v1245_v7 }
 0x181   : > { %2290 = vmatprep.mubr.f32.mxu1 %v2924_v15 }
 0x184   : > { %2291 = vmatmul.mubr.f32.vlgmr.msra.gmra.mrb[0].mxu1 %v2922_v13 }
 0x185   : > { %2401 = vmatpush3.bf16.msra.mxu1 %v2909_v27  ;;  %2293 = vmatprep.mubr.f32.mxu1 %v2938_v31 }
 0x186   : > { %2403 = vmatprep.subr.bf16.mxu1 %v2911_v28 }
 0x188   : > { %2294 = vmatmul.mubr.f32.gmra.mrb[2].mxu1 %v2935_v24 }
 0x189   : > { %2296 = vmatprep.mubr.f32.mxu1 %v2958_v44  ;;  %2405 = vmatpush3.bf16.msra.mxu1 %v2911_v28 }
 0x18a   : > { %2407 = vmatprep.subr.bf16.mxu1 %v2896_v5 }
 0x18c   : > { %2297 = vmatmul.mubr.f32.gmra.mrb[4].mxu1 %v2955_v41 }
 0x18d   : > { %2299 = vmatprep.mubr.f32.mxu1 %v2983_v62 }
 0x190   : > { %2300 = vmatmul.mubr.f32.gmra.mrb[6].mxu1 %v2974_v53 }
 0x191   : > { %2310 = vmatprep.mubr.f32.mxu1 %v2930_v19 }
 0x194   : > { %2311 = vmatmul.mubr.f32.vlgmr.msra.gmra.mrb[0].mxu1 %v2927_v17 }
 0x195   : > { %2409 = vmatpush3.bf16.msra.mxu1 %v2896_v5  ;;  %2313 = vmatprep.mubr.f32.mxu1 %v2950_v37 }
 0x196   : > { %2411 = vmatprep.subr.bf16.mxu1 %v2899_v8 }
 0x198   : > { %2314 = vmatmul.mubr.f32.gmra.mrb[2].mxu1 %v2944_v34 }
 0x199   : > { %2316 = vmatprep.mubr.f32.mxu1 %v2970_v50  ;;  %2413 = vmatpush3.bf16.msra.mxu1 %v2899_v8 }
 0x19a   : > { %2415 = vmatprep.subr.bf16.mxu1 %v2913_v29 }
 0x19c   : > { %2317 = vmatmul.mubr.f32.gmra.mrb[4].mxu1 %v2964_v48 }
 0x19d   : > { %2319 = vmatprep.mubr.f32.mxu1 %v1232_v0 }
 0x1a0   : > { %2320 = vmatmul.mubr.f32.gmra.mrb[6].mxu1 %v1242_v60 }
 0x1a1   : > { %2330 = vmatprep.mubr.f32.mxu1 %v1173_v25 }
 0x1a4   : > { %2331 = vmatmul.mubr.f32.vlgmr.msra.gmra.mrb[0].mxu1 %v1183_v22 }
 0x1a5   : > { %2417 = vmatpush3.bf16.msra.mxu1 %v2913_v29  ;;  %2333 = vmatprep.mubr.f32.mxu1 %v1193_v43 }
 0x1a6   : > { %2419 = vmatprep.subr.bf16.mxu1 %v2915_v30 }
 0x1a8   : > { %2334 = vmatmul.mubr.f32.gmra.mrb[2].mxu1 %v1203_v39 }
 0x1a9   : > { %2336 = vmatprep.mubr.f32.mxu1 %v1213_v56  ;;  %2421 = vmatpush3.bf16.msra.mxu1 %v2915_v30 }
 0x1aa   : > { %2423 = vmatprep.subr.bf16.mxu1 %v2896_v5 }
 0x1ac   : > { %2337 = vmatmul.mubr.f32.gmra.mrb[4].mxu1 %v1223_v52 }
 0x1ad   : > { %2339 = vmatprep.mubr.f32.mxu1 %v1233_v2 }
 0x1b0   : > { %2340 = vmatmul.mubr.f32.gmra.mrb[6].mxu1 %v1243_v63 }
 0x1b1   : > { %2350 = vmatprep.mubr.f32.mxu1 %v2924_v15 }
 0x1b4   : > { %2351 = vmatmul.mubr.f32.vlgmr.msra.gmra.mrb[0].mxu1 %v2922_v13 }
 0x1b5   : > { %2425 = vmatpush3.bf16.msra.mxu1 %v2896_v5  ;;  %2353 = vmatprep.mubr.f32.mxu1 %v2938_v31  ;;  %v2037_v5 = vld [vmem:[%s3110_s4] ss:$0 sm:$0xff] }
 0x1b6   : > { %2427 = vmatprep.subr.bf16.mxu1 %v2899_v8 }
 0x1b8   : > { %2354 = vmatmul.mubr.f32.gmra.mrb[2].mxu1 %v2935_v24 }
 0x1b9   : > { %2356 = vmatprep.mubr.f32.mxu1 %v2958_v44  ;;  %2429 = vmatpush3.bf16.msra.mxu1 %v2899_v8 }
 0x1bc   : > { %2357 = vmatmul.mubr.f32.gmra.mrb[4].mxu1 %v2955_v41 }
 0x1bd   : > { %2359 = vmatprep.mubr.f32.mxu1 %v2983_v62 }
 0x1c0   : > { %2360 = vmatmul.mubr.f32.gmra.mrb[6].mxu1 %v2974_v53 }
 0x1c1   : > { %2370 = vmatprep.mubr.f32.mxu1 %v2924_v15 }
 0x1c4   : > { %2371 = vmatmul.mubr.f32.vlgmr.msra.gmra.mrb[0].mxu1 %v2922_v13 }
 0x1c5   : > { %2373 = vmatprep.mubr.f32.mxu1 %v2938_v31 }
 0x1c8   : > { %2374 = vmatmul.mubr.f32.gmra.mrb[2].mxu1 %v2935_v24 }
 0x1c9   : > { %2376 = vmatprep.mubr.f32.mxu1 %v2958_v44 }
 0x1cc   : > { %2377 = vmatmul.mubr.f32.gmra.mrb[4].mxu1 %v2955_v41 }
 0x1cd   : > { %2379 = vmatprep.mubr.f32.mxu1 %v2983_v62 }
 0x1d0   : > { %2380 = vmatmul.mubr.f32.gmra.mrb[6].mxu1 %v2974_v53 }
 0x297   : > { %v2372_v8 = vpop.f32.mrb[0].mxu1 }
 0x298   : > { %v2438_v26 = vadd.f32 %v2372_v8, %v2037_v5  ;;  %v1842_v27 = vpop.f32.mrb[1].mxu1 }
 0x299   : > { %v2439_v28 = vadd.f32 %v2037_v5, %v1842_v27 }
 0x29a   : > { %v2039_v29 = vmul.f32 -1.442695, %v2438_v26 }
 0x29b   : > { %v2038_v30 = vmul.f32 -1.442695, %v2439_v28  ;;  %v2375_v9 = vpop.f32.mrb[2].mxu1 }
 0x29c   : > { %2599 = vpow2.f32 %v2039_v29  ;;  %v2440_v10 = vadd.f32 %v2375_v9, %v2037_v5  ;;  %v1854_v11 = vpop.f32.mrb[3].mxu1 }
 0x29d   : > { %2601 = vpow2.f32 %v2038_v30  ;;  %v2441_v12 = vadd.f32 %v2037_v5, %v1854_v11 }
 0x29e   : > { %v2041_v13 = vmul.f32 -1.442695, %v2440_v10 }
 0x29f   : > { %v2040_v14 = vmul.f32 -1.442695, %v2441_v12  ;;  %v2378_v15 = vpop.f32.mrb[4].mxu1 }
 0x2a0   : > { %2603 = vpow2.f32 %v2041_v13  ;;  %v2442_v16 = vadd.f32 %v2378_v15, %v2037_v5  ;;  %v1866_v17 = vpop.f32.mrb[5].mxu1 }
 0x2a1   : > { %2605 = vpow2.f32 %v2040_v14  ;;  %v2443_v18 = vadd.f32 %v2037_v5, %v1866_v17 }
 0x2a2   : > { %v2043_v19 = vmul.f32 -1.442695, %v2442_v16 }
 0x2a3   : > { %v2042_v20 = vmul.f32 -1.442695, %v2443_v18  ;;  %v2381_v22 = vpop.f32.mrb[6].mxu1 }
 0x2a4   : > { %2607 = vpow2.f32 %v2043_v19  ;;  %v2444_v23 = vadd.f32 %v2381_v22, %v2037_v5  ;;  %v1878_v24 = vpop.f32.mrb[7].mxu1 }
 0x2a5   : > { %2609 = vpow2.f32 %v2042_v20  ;;  %v2445_v25 = vadd.f32 %v2037_v5, %v1878_v24 }
 0x2a6   : > { %v2600_v31 = vpop.eup %2599  ;;  %v2045_v32 = vmul.f32 -1.442695, %v2444_v23 }
 0x2a7   : > { %v2602_v33 = vpop.eup %2601  ;;  %v1913_v34 = vadd.f32 1.0, %v2600_v31  ;;  %v2044_v35 = vmul.f32 -1.442695, %v2445_v25 }
 0x2a8   : > { %v1912_v36 = vadd.f32 1.0, %v2602_v33  ;;  %2611 = vpow2.f32 %v2045_v32 }
 0x2a9   : > { %2613 = vrcp.f32 %v1913_v34 }
 0x2aa   : > { %v2604_v37 = vpop.eup %2603  ;;  %2615 = vrcp.f32 %v1912_v36 }
 0x2ab   : > { %v2606_v38 = vpop.eup %2605  ;;  %v1915_v39 = vadd.f32 1.0, %v2604_v37  ;;  %2617 = vpow2.f32 %v2044_v35 }
 0x2ac   : > { %v1914_v40 = vadd.f32 1.0, %v2606_v38 }
 0x2ad   : > { %2619 = vrcp.f32 %v1915_v39 }
 0x2ae   : > { %v2608_v41 = vpop.eup %2607  ;;  %2621 = vrcp.f32 %v1914_v40 }
 0x2af   : > { %v2610_v42 = vpop.eup %2609  ;;  %v1917_v43 = vadd.f32 1.0, %v2608_v41 }
 0x2b0   : > { %v1916_v44 = vadd.f32 1.0, %v2610_v42 }
 0x2b1   : > { %2623 = vrcp.f32 %v1917_v43 }
 0x2b2   : > { %v2612_v45 = vpop.eup %2611  ;;  %2625 = vrcp.f32 %v1916_v44 }
 0x2b3   : > { %v2614_v46 = vpop.eup %2613  ;;  %v1919_v47 = vadd.f32 1.0, %v2612_v45 }
 0x2b4   : > { %v2616_v48 = vpop.eup %2615  ;;  %1938 = vst.msk [vmem:[%s218_s10 + $0x8] sm:$0xff] %vm1936_vm3, %v2614_v46 }
 0x2b5   : > { %v2618_v49 = vpop.eup %2617  ;;  %1937 = vst.msk [vmem:[%s218_s10] sm:$0xff] %vm1936_vm3, %v2616_v48  ;;  %2627 = vrcp.f32 %v1919_v47 }
 0x2b6   : > { %v1918_v50 = vadd.f32 1.0, %v2618_v49 }
 0x2b7   : > { %v2620_v51 = vpop.eup %2619 }
 0x2b8   : > { %v2622_v52 = vpop.eup %2621  ;;  %1940 = vst.msk [vmem:[%s218_s10 + $0x18] sm:$0xff] %vm1936_vm3, %v2620_v51  ;;  %2629 = vrcp.f32 %v1918_v50 }
 0x2b9   : > { %1939 = vst.msk [vmem:[%s218_s10 + $0x10] sm:$0xff] %vm1936_vm3, %v2622_v52 }
 0x2bb   : > { %v2624_v53 = vpop.eup %2623 }
 0x2bc   : > { %v2626_v54 = vpop.eup %2625  ;;  %1942 = vst.msk [vmem:[%s218_s10 + $0x28] sm:$0xff] %vm1936_vm3, %v2624_v53 }
 0x2bd   : > { %1941 = vst.msk [vmem:[%s218_s10 + $0x20] sm:$0xff] %vm1936_vm3, %v2626_v54 }
 0x2bf   : > { %v2628_v55 = vpop.eup %2627 }
 0x2c0   : > { %1944 = vst.msk [vmem:[%s218_s10 + $0x38] sm:$0xff] %vm1936_vm3, %v2628_v55 }
 0x2c2   : > { %v2630_v56 = vpop.eup %2629 }
 0x2c3   : > { %1943 = vst.msk [vmem:[%s218_s10 + $0x30] sm:$0xff] %vm1936_vm3, %v2630_v56 }
 0x2c4   : > { %2644 = shalt.err (!%p2641_p3)
}
 0x2c5   : > { %s2645_s26 = scalar_lea.hbm %s3058_s15, 1024  ;;  %s2649_s7 = scalar_lea.hbm %s3111_s5, 2048 }
 0x2c6   : > { %p2646_p4 = scmp.ne.s32.totalorder %s3058_s15, %s2645_s26  ;;  %p2650_p9 = scmp.lt.u32.totalorder %s3058_s15, %s3111_s5 }
 0x2c7   : > { %p2651_p10 = scmp.lt.u32.totalorder %s2649_s7, %s2645_s26  ;;  %p2653_p12 = scmp.lt.u32.totalorder %s2645_s26, %s3058_s15 }
 0x2c8   : > { %p2647_p7 = pnand %p2646_p4, %p2766_p5 }
 0x2c9   : > { %p2652_p11 = por %p2651_p10, %p2650_p9 }
 0x2ca   : > { %p2648_p8 = pneg %p2647_p7 }
 0x2cb   : > { %p2654_p13 = por %p2653_p12, %p2652_p11 }
 0x2cd   : > { %p2655_p0 = pnand %p2654_p13, %p2648_p8 }
 0x2cf   : > { %2658 = shalt.err (!%p2655_p0)
}
 0x2d0   : > { %s2696_s10 = smov 128   ;;  %s2697_s11 = smov 8  }
 0x2d1   : > { %2526 = dma.vmem_to_hbm [thread:$0]  (%p2766_p5), %s3060_s12, 1024, %s3058_s15, %s3065_s16, %s2696_s10, %s2696_s10, %s2697_s11  }
 0x2d2 PF: > { %p2532_p1 = scmp.ge.s32.totalorder %s2693_s21, 2  ;;  %s1974_s13 = sand.u32 1, %s2681_s18  }
 0x2d3   : > { %s1975_s14 = scalar_lea.sflag [#allocation3], %s1974_s13 }
 0x2d4   : > { %p2529_p2 = pnand %p2532_p1, %p2770_p6 }
 0x2d6   : > { %2676 = dma.done.wait (!%p2529_p2), %s1975_s14, 1024  }
 0x2d7   : > { %2678 = vsyncadd (!%p2529_p2), %s1975_s14, 4294966272  ;;  %p15_p3 = scmp.ge.s32.totalorder %s2753_s24, 4   ;;  %s3114_s18 = smov %s2685_s19 }
 0x2d8   : > { %s3115_s19 = smov %s2689_s20  ;;  %s3116_s20 = smov %s2764_s27 }
 0x2d9   : > { %s3117_s21 = smov %s2753_s24  ;;  %17 = sbr.rel (!%p15_p3) target bundleno = 3 (0x3), region = 75 }
 0x2e0   :  { %1980 = vsyncpa [#allocation3], 1 }
 0x2e1   :  { %1982 = vsyncpa [#allocation3 + $0x1], 1 }

</bundles_post_ra>
